<compile_context>
chip_gen: v6e
topology: v6e:2x2x1
jax: 0.10.0
libtpu: 0.0.40
codegen_flags: <defaults>
</compile_context>

<pallas_src>
import functools

import jax
import jax.numpy as jnp
from jax.experimental import pallas as pl
from jax.experimental.pallas import tpu as pltpu

MAX_LENGTH = 10
HIDDEN_SIZE = 32      # small demo shape (module default was 256)
OUTPUT_SIZE = 64      # vocabulary size for the demo

_NEG = -1e30          # "minus infinity" bias for padded softmax lanes


def _round_up(x, m=128):
    return ((x + m - 1) // m) * m


# ----------------------------------------------------------------------------
# One decode step (executed once per grid index t).
# ----------------------------------------------------------------------------
def _decode_step_kernel(tok_ref, emb_ref, hid0_ref, enc_ref, w_ref, b_ref,
                        out_ref, h_scr, *, H_p, L_p, V_p):
    # static column offsets inside the packed weight / bias slabs
    a0 = 0                    # attention Linear      (2Hp, Lp)
    c0 = a0 + L_p             # attn_combine Linear   (2Hp, Hp)
    g0 = c0 + H_p             # fused GRU weights     (2Hp, 4Hp)
    o0 = g0 + 4 * H_p         # output projection     (Hp,  Vp)

    t = pl.program_id(0)

    # step 0: load the caller-provided initial hidden state into the carry
    @pl.when(t == 0)
    def _():
        h_scr[...] = hid0_ref[...]

    emb = emb_ref[0]          # (1, Hp) embedded token (eval mode: dropout = id)
    hid = h_scr[...]          # (1, Hp) previous hidden state

    # --- attn_weights = softmax( attn( cat(embedded, hidden) ) ) -------------
    cat_eh = jnp.concatenate([emb, hid], axis=1)                        # (1, 2Hp)
    scores = jnp.dot(cat_eh, w_ref[:, a0:a0 + L_p],
                     preferred_element_type=jnp.float32) + b_ref[:, a0:a0 + L_p]
    s_max = jnp.max(scores, axis=1, keepdims=True)
    s_exp = jnp.exp(scores - s_max)         # padded lanes have bias -1e30 -> 0
    inv = pl.reciprocal(jnp.sum(s_exp, axis=1, keepdims=True), approx=True)
    attw = s_exp * inv                                                  # (1, Lp)

    # --- attn_applied = attn_weights @ encoder_outputs ------------------------
    attn_applied = jnp.dot(attw, enc_ref[...],
                           preferred_element_type=jnp.float32)          # (1, Hp)

    # --- output = relu( attn_combine( cat(embedded, attn_applied) ) ) ---------
    cat_ea = jnp.concatenate([emb, attn_applied], axis=1)
    comb = jnp.dot(cat_ea, w_ref[:, c0:c0 + H_p],
                   preferred_element_type=jnp.float32) + b_ref[:, c0:c0 + H_p]
    x = jnp.maximum(comb, 0.0)                                          # (1, Hp)

    # --- single-step GRU; one fused matmul gives [r_pre | z_pre | i_n | h_n] --
    cat_xh = jnp.concatenate([x, hid], axis=1)
    gates = jnp.dot(cat_xh, w_ref[:, g0:g0 + 4 * H_p],
                    preferred_element_type=jnp.float32) + b_ref[:, g0:g0 + 4 * H_p]
    rz = jax.nn.sigmoid(gates[:, 0:2 * H_p])        # one sigmoid for r and z
    r = rz[:, 0:H_p]
    z = rz[:, H_p:2 * H_p]
    i_n = gates[:, 2 * H_p:3 * H_p]
    h_n = gates[:, 3 * H_p:4 * H_p]
    n = jnp.tanh(i_n + r * h_n)
    h_new = (1.0 - z) * n + z * hid                                     # (1, Hp)

    # --- log_softmax( out(h_new) ) --------------------------------------------
    logits = jnp.dot(h_new, w_ref[0:H_p, o0:o0 + V_p],
                     preferred_element_type=jnp.float32) + b_ref[:, o0:o0 + V_p]
    l_max = jnp.max(logits, axis=1, keepdims=True)
    shifted = logits - l_max
    lse = jnp.log(jnp.sum(jnp.exp(shifted), axis=1, keepdims=True))
    logp = shifted - lse                                                # (1, Vp)

    # carry the hidden state; one dense lane-aligned store of the packed row
    h_scr[...] = h_new
    out_ref[0] = jnp.concatenate([logp, h_new, attw], axis=1)           # (1, Vp+Hp+Lp)


# ----------------------------------------------------------------------------
# One-time parameter packing (transposes / padding / GRU gate fusion).
# ----------------------------------------------------------------------------
def pack_params(raw, hidden_size, output_size, max_length):
    H, V, L = hidden_size, output_size, max_length
    Hp, Vp, Lp = _round_up(H), _round_up(V), _round_up(L)
    f32 = jnp.float32

    # embedding table (V, H) -> (V, 1, Hp), zero-padded feature lanes
    emb = jnp.zeros((V, Hp), f32).at[:, :H].set(raw["embedding"].astype(f32))
    emb = emb.reshape(V, 1, Hp)

    # attn Linear: weight (L, 2H); rows 0:H act on embedded, H:2H on hidden
    attn_wT = raw["attn_w"].T.astype(f32)                     # (2H, L)
    w_attn = jnp.zeros((2 * Hp, Lp), f32)
    w_attn = w_attn.at[:H, :L].set(attn_wT[:H])
    w_attn = w_attn.at[Hp:Hp + H, :L].set(attn_wT[H:])
    b_attn = jnp.full((1, Lp), _NEG, f32).at[0, :L].set(raw["attn_b"].astype(f32))

    # attn_combine Linear: weight (H, 2H)
    comb_wT = raw["comb_w"].T.astype(f32)                     # (2H, H)
    w_comb = jnp.zeros((2 * Hp, Hp), f32)
    w_comb = w_comb.at[:H, :H].set(comb_wT[:H])
    w_comb = w_comb.at[Hp:Hp + H, :H].set(comb_wT[H:])
    b_comb = jnp.zeros((1, Hp), f32).at[0, :H].set(raw["comb_b"].astype(f32))

    # GRU: pack ih/hh weights so that cat(x, hid) @ W = [r_pre | z_pre | i_n | h_n]
    wih_T = raw["gru_w_ih"].T.astype(f32)                     # (H, 3H), cols [r|z|n]
    whh_T = raw["gru_w_hh"].T.astype(f32)
    w_gru = jnp.zeros((2 * Hp, 4 * Hp), f32)
    # rows multiplying x
    w_gru = w_gru.at[:H, 0 * Hp:0 * Hp + H].set(wih_T[:, 0 * H:1 * H])   # r
    w_gru = w_gru.at[:H, 1 * Hp:1 * Hp + H].set(wih_T[:, 1 * H:2 * H])   # z
    w_gru = w_gru.at[:H, 2 * Hp:2 * Hp + H].set(wih_T[:, 2 * H:3 * H])   # i_n
    # rows multiplying the previous hidden state
    w_gru = w_gru.at[Hp:Hp + H, 0 * Hp:0 * Hp + H].set(whh_T[:, 0 * H:1 * H])
    w_gru = w_gru.at[Hp:Hp + H, 1 * Hp:1 * Hp + H].set(whh_T[:, 1 * H:2 * H])
    w_gru = w_gru.at[Hp:Hp + H, 3 * Hp:3 * Hp + H].set(whh_T[:, 2 * H:3 * H])  # h_n
    b_gru = jnp.zeros((1, 4 * Hp), f32)
    b_gru = b_gru.at[0, 0 * Hp:0 * Hp + H].set(
        raw["gru_b_ih"][:H].astype(f32) + raw["gru_b_hh"][:H].astype(f32))
    b_gru = b_gru.at[0, 1 * Hp:1 * Hp + H].set(
        raw["gru_b_ih"][H:2 * H].astype(f32) + raw["gru_b_hh"][H:2 * H].astype(f32))
    b_gru = b_gru.at[0, 2 * Hp:2 * Hp + H].set(raw["gru_b_ih"][2 * H:].astype(f32))
    b_gru = b_gru.at[0, 3 * Hp:3 * Hp + H].set(raw["gru_b_hh"][2 * H:].astype(f32))

    # output Linear: weight (V, H); padded to 2Hp rows (only the first H used)
    w_out = jnp.zeros((2 * Hp, Vp), f32).at[:H, :V].set(raw["out_w"].T.astype(f32))
    b_out = jnp.full((1, Vp), _NEG, f32).at[0, :V].set(raw["out_b"].astype(f32))

    # lane-aligned slabs: one weight DMA + one bias DMA per call
    w_slab = jnp.concatenate([w_attn, w_comb, w_gru, w_out], axis=1)   # (2Hp, Lp+Hp+4Hp+Vp)
    b_slab = jnp.concatenate([b_attn, b_comb, b_gru, b_out], axis=1)   # (1,   Lp+Hp+4Hp+Vp)
    return {"emb": emb, "w_slab": w_slab, "b_slab": b_slab}


# ----------------------------------------------------------------------------
# Multi-step decode (T steps, teacher-forced token ids) in ONE pallas_call.
# ----------------------------------------------------------------------------
@functools.partial(jax.jit, static_argnames=("hidden_size", "max_length", "output_size"))
def attn_decoder_decode(tokens, hidden, encoder_outputs, packed, *,
                        hidden_size, max_length, output_size):
    H, L, V = hidden_size, max_length, output_size
    Hp, Lp, Vp = _round_up(H), _round_up(L), _round_up(V)
    T = tokens.shape[0]
    w_cols = Lp + Hp + 4 * Hp + Vp
    out_w = Vp + Hp + Lp

    tokens = tokens.astype(jnp.int32)
    hid0 = jnp.pad(hidden.reshape(1, H).astype(jnp.float32), ((0, 0), (0, Hp - H)))
    enc = jnp.pad(encoder_outputs.astype(jnp.float32), ((0, Lp - L), (0, Hp - H)))

    kernel = functools.partial(_decode_step_kernel, H_p=Hp, L_p=Lp, V_p=Vp)

    grid_spec = pltpu.PrefetchScalarGridSpec(
        num_scalar_prefetch=1,
        grid=(T,),
        in_specs=[
            # per-step gather of one embedding row via the prefetched token id
            pl.BlockSpec((1, 1, Hp), lambda t, tok: (tok[t], 0, 0)),
            # constant blocks below are DMA'd once and stay resident in VMEM
            pl.BlockSpec((1, Hp), lambda t, tok: (0, 0)),
            pl.BlockSpec((Lp, Hp), lambda t, tok: (0, 0)),
            pl.BlockSpec((2 * Hp, w_cols), lambda t, tok: (0, 0)),
            pl.BlockSpec((1, w_cols), lambda t, tok: (0, 0)),
        ],
        out_specs=pl.BlockSpec((1, 1, out_w), lambda t, tok: (t, 0, 0)),
        scratch_shapes=[pltpu.VMEM((1, Hp), jnp.float32)],   # hidden-state carry
    )

    packed_out = pl.pallas_call(
        kernel,
        grid_spec=grid_spec,
        out_shape=jax.ShapeDtypeStruct((T, 1, out_w), jnp.float32),
        compiler_params=pltpu.CompilerParams(
            dimension_semantics=("arbitrary",)),   # sequential hidden-state carry
    )(tokens, packed["emb"], hid0, enc, packed["w_slab"], packed["b_slab"])

    log_probs = packed_out[:, 0, :V]                         # (T, V)
    hid_all = packed_out[:, 0, Vp:Vp + H]                    # (T, H)
    attn_weights = packed_out[:, 0, Vp + Hp:Vp + Hp + L]     # (T, L)
    new_hidden = hid_all[T - 1].reshape(1, 1, H)
    return log_probs, new_hidden, attn_weights


def attn_decoder_forward(input_token, hidden, encoder_outputs, packed, *,
                         hidden_size, max_length, output_size):
    """Single step, mirrors AttnDecoderRNN.forward (eval mode)."""
    # TODO(synk): training-mode dropout (p=0.1) on the embedded input is not
    # implemented; this is the eval-mode (identity) path.
    tokens = jnp.reshape(input_token, (1,)).astype(jnp.int32)
    log_probs, new_hidden, attn_weights = attn_decoder_decode(
        tokens, hidden, encoder_outputs, packed,
        hidden_size=hidden_size, max_length=max_length, output_size=output_size)
    return log_probs, new_hidden, attn_weights   # (1, V), (1, 1, H), (1, L)


# ----------------------------------------------------------------------------
# Pure-JAX reference (unpadded) for correctness checking.
# ----------------------------------------------------------------------------
def reference_decode(tokens, hidden, encoder_outputs, raw):
    H = hidden.shape[-1]

    def step(h, tok):
        emb = raw["embedding"][tok].reshape(1, H)
        scores = jnp.concatenate([emb, h], 1) @ raw["attn_w"].T + raw["attn_b"]
        attw = jax.nn.softmax(scores, axis=1)
        attn_applied = attw @ encoder_outputs
        comb = jnp.concatenate([emb, attn_applied], 1) @ raw["comb_w"].T + raw["comb_b"]
        x = jax.nn.relu(comb)
        gi = x @ raw["gru_w_ih"].T + raw["gru_b_ih"]
        gh = h @ raw["gru_w_hh"].T + raw["gru_b_hh"]
        i_r, i_z, i_n = jnp.split(gi, 3, axis=1)
        h_r, h_z, h_n = jnp.split(gh, 3, axis=1)
        r = jax.nn.sigmoid(i_r + h_r)
        z = jax.nn.sigmoid(i_z + h_z)
        n = jnp.tanh(i_n + r * h_n)
        h_new = (1.0 - z) * n + z * h
        logits = h_new @ raw["out_w"].T + raw["out_b"]
        return h_new, (jax.nn.log_softmax(logits, axis=1), attw)

    h_final, (logps, attws) = jax.lax.scan(step, hidden.reshape(1, H), tokens)
    return logps[:, 0], h_final, attws[:, 0]


def init_params(key, hidden_size, output_size, max_length):
    """Deterministic synthetic parameters with the same shapes as the module."""
    ks = jax.random.split(key, 12)
    H, V, L = hidden_size, output_size, max_length

    def u(k, shape, fan_in):
        bound = 1.0 / jnp.sqrt(jnp.float32(fan_in))
        return jax.random.uniform(k, shape, jnp.float32, -bound, bound)

    return {
        "embedding": jax.random.normal(ks[0], (V, H), jnp.float32),
        "attn_w": u(ks[1], (L, 2 * H), 2 * H),
        "attn_b": u(ks[2], (L,), 2 * H),
        "comb_w": u(ks[3], (H, 2 * H), 2 * H),
        "comb_b": u(ks[4], (H,), 2 * H),
        "gru_w_ih": u(ks[5], (3 * H, H), H),
        "gru_b_ih": u(ks[6], (3 * H,), H),
        "gru_w_hh": u(ks[7], (3 * H, H), H),
        "gru_b_hh": u(ks[8], (3 * H,), H),
        "out_w": u(ks[9], (V, H), H),
        "out_b": u(ks[10], (V,), H),
    }


if __name__ == "__main__":
    key = jax.random.PRNGKey(0)
    k_param, k_hid, k_enc, k_tok = jax.random.split(key, 4)

    raw = init_params(k_param, HIDDEN_SIZE, OUTPUT_SIZE, MAX_LENGTH)
    packed = pack_params(raw, HIDDEN_SIZE, OUTPUT_SIZE, MAX_LENGTH)   # once, at init

    T = 8
    tokens = jax.random.randint(k_tok, (T,), 0, OUTPUT_SIZE, dtype=jnp.int32)
    hidden = jax.random.normal(k_hid, (1, 1, HIDDEN_SIZE), jnp.float32)
    encoder_outputs = jax.random.normal(k_enc, (MAX_LENGTH, HIDDEN_SIZE), jnp.float32)

    # full T-step decode in one gridded pallas_call
    log_probs, new_hidden, attn_weights = attn_decoder_decode(
        tokens, hidden, encoder_outputs, packed,
        hidden_size=HIDDEN_SIZE, max_length=MAX_LENGTH, output_size=OUTPUT_SIZE)
    jax.block_until_ready((log_probs, new_hidden, attn_weights))

    # single-step call matching the module's forward signature
    lp1, hid1, aw1 = attn_decoder_forward(
        tokens[0], hidden, encoder_outputs, packed,
        hidden_size=HIDDEN_SIZE, max_length=MAX_LENGTH, output_size=OUTPUT_SIZE)
    jax.block_until_ready((lp1, hid1, aw1))

    # correctness vs pure-JAX reference (tolerance covers approx reciprocal)
    ref_lp, ref_hid, ref_aw = reference_decode(tokens, hidden, encoder_outputs, raw)

    assert log_probs.shape == (T, OUTPUT_SIZE)
    assert new_hidden.shape == (1, 1, HIDDEN_SIZE)
    assert attn_weights.shape == (T, MAX_LENGTH)
    assert lp1.shape == (1, OUTPUT_SIZE)
    assert hid1.shape == (1, 1, HIDDEN_SIZE)
    assert aw1.shape == (1, MAX_LENGTH)
    assert jnp.allclose(jnp.sum(jnp.exp(log_probs), axis=-1), 1.0, atol=1e-3)
    assert jnp.allclose(jnp.sum(attn_weights, axis=-1), 1.0, atol=1e-2)
    assert jnp.allclose(log_probs, ref_lp, rtol=2e-2, atol=2e-2)
    assert jnp.allclose(attn_weights, ref_aw, rtol=2e-2, atol=2e-2)
    assert jnp.allclose(new_hidden.reshape(1, -1), ref_hid, rtol=2e-2, atol=2e-2)
    assert jnp.allclose(lp1, ref_lp[:1], rtol=2e-2, atol=2e-2)

    print("KERNEL_OK")
</pallas_src>

<mosaic_0001>
module attributes {stable_mosaic.version = 11 : i64} {
  func.func @_decode_step_kernel(%arg0: i32, %arg1: memref<8xi32, #tpu.memory_space<smem>>, %arg2: memref<1x1x128xf32, #tpu.memory_space<vmem>>, %arg3: memref<1x128xf32, #tpu.memory_space<vmem>>, %arg4: memref<128x128xf32, #tpu.memory_space<vmem>>, %arg5: memref<256x896xf32, #tpu.memory_space<vmem>>, %arg6: memref<1x896xf32, #tpu.memory_space<vmem>>, %arg7: memref<1x1x384xf32, #tpu.memory_space<vmem>>, %arg8: memref<1x128xf32, #tpu.memory_space<vmem>>) attributes {dimension_semantics = [#tpu.dimension_semantics<arbitrary>], iteration_bounds = array<i64: 8>, scalar_prefetch = 1 : i64, scratch_operands = 1 : i64, tpu.core_type = #tpu.core_type<tc>, window_params = [{transform_indices = @transform_0, window_bounds = array<i64: 1, 1, 128>}, {pipeline_mode = #tpu.pipeline_mode<synchronous>, transform_indices = @transform_1, window_bounds = array<i64: 1, 128>}, {pipeline_mode = #tpu.pipeline_mode<synchronous>, transform_indices = @transform_2, window_bounds = array<i64: 128, 128>}, {pipeline_mode = #tpu.pipeline_mode<synchronous>, transform_indices = @transform_3, window_bounds = array<i64: 256, 896>}, {pipeline_mode = #tpu.pipeline_mode<synchronous>, transform_indices = @transform_4, window_bounds = array<i64: 1, 896>}, {transform_indices = @transform_5, window_bounds = array<i64: 1, 1, 384>}]} {
    %c0_i32 = arith.constant 0 : i32
    %0 = arith.cmpi eq, %arg0, %c0_i32 : i32
    %1 = arith.extui %0 : i1 to i32
    %c0_i32_0 = arith.constant 0 : i32
    %2 = arith.cmpi ne, %1, %c0_i32_0 : i32
    scf.if %2 {
      %c0_36 = arith.constant 0 : index
      %c0_37 = arith.constant 0 : index
      %72 = vector.load %arg3[%c0_36, %c0_37] : memref<1x128xf32, #tpu.memory_space<vmem>>, vector<1x128xf32>
      %c0_38 = arith.constant 0 : index
      %c0_39 = arith.constant 0 : index
      %73 = vector.load %arg8[%c0_38, %c0_39] : memref<1x128xf32, #tpu.memory_space<vmem>>, vector<1x128xf32>
      tpu.vector_store %arg8[%c0_38, %c0_39], %72 {strides = array<i32>} : memref<1x128xf32, #tpu.memory_space<vmem>>, vector<1x128xf32>,
    } else {
    }
    %c0 = arith.constant 0 : index
    %c0_1 = arith.constant 0 : index
    %c0_2 = arith.constant 0 : index
    %3 = vector.load %arg2[%c0, %c0_1, %c0_2] : memref<1x1x128xf32, #tpu.memory_space<vmem>>, vector<1x1x128xf32>
    %4 = vector.shape_cast %3 : vector<1x1x128xf32> to vector<1x128xf32>
    %c0_3 = arith.constant 0 : index
    %c0_4 = arith.constant 0 : index
    %5 = vector.load %arg8[%c0_3, %c0_4] : memref<1x128xf32, #tpu.memory_space<vmem>>, vector<1x128xf32>
    %6 = tpu.concatenate %4, %5 in 1 : vector<1x128xf32>, vector<1x128xf32> -> vector<1x256xf32>
    %c0_5 = arith.constant 0 : index
    %c0_6 = arith.constant 0 : index
    %7 = vector.load %arg5[%c0_5, %c0_6] : memref<256x896xf32, #tpu.memory_space<vmem>>, vector<256x128xf32>
    %cst = arith.constant dense<0.000000e+00> : vector<1x128xf32>
    %8 = tpu.matmul %6, %7, %cst {dimension_numbers = #tpu.dot_dimension_numbers<[1], [0], [0], [1], [0, 0, 1, 1], [], []>} : vector<1x256xf32>, vector<256x128xf32>, vector<1x128xf32> -> vector<1x128xf32>
    %c0_7 = arith.constant 0 : index
    %c0_8 = arith.constant 0 : index
    %9 = vector.load %arg6[%c0_7, %c0_8] : memref<1x896xf32, #tpu.memory_space<vmem>>, vector<1x128xf32>
    %10 = arith.addf %8, %9 : vector<1x128xf32>
    %cst_9 = arith.constant dense<0xFF800000> : vector<1xf32>
    %11 = vector.multi_reduction <maximumf>, %10, %cst_9 [1] : vector<1x128xf32> to vector<1xf32>
    %12 = vector.shape_cast %11 : vector<1xf32> to vector<1x1xf32>
    %13 = vector.broadcast %12 : vector<1x1xf32> to vector<1x128xf32>
    %14 = arith.subf %10, %13 : vector<1x128xf32>
    %15 = math.exp %14 : vector<1x128xf32>
    %cst_10 = arith.constant dense<0.000000e+00> : vector<1xf32>
    %16 = vector.multi_reduction <add>, %15, %cst_10 [1] : vector<1x128xf32> to vector<1xf32>
    %17 = vector.shape_cast %16 : vector<1xf32> to vector<1x1xf32>
    %18 = tpu.reciprocal %17 {approx = true} : vector<1x1xf32> -> vector<1x1xf32>
    %19 = vector.broadcast %18 : vector<1x1xf32> to vector<1x128xf32>
    %20 = arith.mulf %15, %19 : vector<1x128xf32>
    %c0_11 = arith.constant 0 : index
    %c0_12 = arith.constant 0 : index
    %21 = vector.load %arg4[%c0_11, %c0_12] : memref<128x128xf32, #tpu.memory_space<vmem>>, vector<128x128xf32>
    %cst_13 = arith.constant dense<0.000000e+00> : vector<1x128xf32>
    %22 = tpu.matmul %20, %21, %cst_13 {dimension_numbers = #tpu.dot_dimension_numbers<[1], [0], [0], [1], [0, 0, 1, 1], [], []>} : vector<1x128xf32>, vector<128x128xf32>, vector<1x128xf32> -> vector<1x128xf32>
    %23 = tpu.concatenate %4, %22 in 1 : vector<1x128xf32>, vector<1x128xf32> -> vector<1x256xf32>
    %c0_14 = arith.constant 0 : index
    %c128 = arith.constant 128 : index
    %24 = vector.load %arg5[%c0_14, %c128] : memref<256x896xf32, #tpu.memory_space<vmem>>, vector<256x128xf32>
    %cst_15 = arith.constant dense<0.000000e+00> : vector<1x128xf32>
    %25 = tpu.matmul %23, %24, %cst_15 {dimension_numbers = #tpu.dot_dimension_numbers<[1], [0], [0], [1], [0, 0, 1, 1], [], []>} : vector<1x256xf32>, vector<256x128xf32>, vector<1x128xf32> -> vector<1x128xf32>
    %c0_16 = arith.constant 0 : index
    %c128_17 = arith.constant 128 : index
    %26 = vector.load %arg6[%c0_16, %c128_17] : memref<1x896xf32, #tpu.memory_space<vmem>>, vector<1x128xf32>
    %27 = arith.addf %25, %26 : vector<1x128xf32>
    %cst_18 = arith.constant 0.000000e+00 : f32
    %28 = vector.broadcast %cst_18 : f32 to vector<1x128xf32>
    %29 = arith.maximumf %27, %28 : vector<1x128xf32>
    %30 = tpu.concatenate %29, %5 in 1 : vector<1x128xf32>, vector<1x128xf32> -> vector<1x256xf32>
    %c0_19 = arith.constant 0 : index
    %c256 = arith.constant 256 : index
    %31 = vector.load %arg5[%c0_19, %c256] : memref<256x896xf32, #tpu.memory_space<vmem>>, vector<256x512xf32>
    %cst_20 = arith.constant dense<0.000000e+00> : vector<1x512xf32>
    %32 = tpu.matmul %30, %31, %cst_20 {dimension_numbers = #tpu.dot_dimension_numbers<[1], [0], [0], [1], [0, 0, 1, 1], [], []>} : vector<1x256xf32>, vector<256x512xf32>, vector<1x512xf32> -> vector<1x512xf32>
    %c0_21 = arith.constant 0 : index
    %c256_22 = arith.constant 256 : index
    %33 = vector.load %arg6[%c0_21, %c256_22] : memref<1x896xf32, #tpu.memory_space<vmem>>, vector<1x512xf32>
    %34 = arith.addf %32, %33 : vector<1x512xf32>
    %35 = vector.extract_strided_slice %34 {offsets = [0, 0], sizes = [1, 256], strides = [1, 1]} : vector<1x512xf32> to vector<1x256xf32>
    %36 = arith.negf %35 : vector<1x256xf32>
    %37 = math.exp %36 : vector<1x256xf32>
    %cst_23 = arith.constant 1.000000e+00 : f32
    %38 = vector.broadcast %cst_23 : f32 to vector<1x256xf32>
    %39 = arith.addf %38, %37 : vector<1x256xf32>
    %40 = arith.divf %38, %39 : vector<1x256xf32>
    %41 = vector.extract_strided_slice %40 {offsets = [0, 0], sizes = [1, 128], strides = [1, 1]} : vector<1x256xf32> to vector<1x128xf32>
    %42 = vector.extract_strided_slice %40 {offsets = [0, 128], sizes = [1, 128], strides = [1, 1]} : vector<1x256xf32> to vector<1x128xf32>
    %43 = vector.extract_strided_slice %34 {offsets = [0, 256], sizes = [1, 128], strides = [1, 1]} : vector<1x512xf32> to vector<1x128xf32>
    %44 = vector.extract_strided_slice %34 {offsets = [0, 384], sizes = [1, 128], strides = [1, 1]} : vector<1x512xf32> to vector<1x128xf32>
    %45 = arith.mulf %41, %44 : vector<1x128xf32>
    %46 = arith.addf %43, %45 : vector<1x128xf32>
    %47 = math.tanh %46 : vector<1x128xf32>
    %cst_24 = arith.constant 1.000000e+00 : f32
    %48 = vector.broadcast %cst_24 : f32 to vector<1x128xf32>
    %49 = arith.subf %48, %42 : vector<1x128xf32>
    %50 = arith.mulf %49, %47 : vector<1x128xf32>
    %51 = arith.mulf %42, %5 : vector<1x128xf32>
    %52 = arith.addf %50, %51 : vector<1x128xf32>
    %c0_25 = arith.constant 0 : index
    %c768 = arith.constant 768 : index
    %53 = vector.load %arg5[%c0_25, %c768] : memref<256x896xf32, #tpu.memory_space<vmem>>, vector<128x128xf32>
    %cst_26 = arith.constant dense<0.000000e+00> : vector<1x128xf32>
    %54 = tpu.matmul %52, %53, %cst_26 {dimension_numbers = #tpu.dot_dimension_numbers<[1], [0], [0], [1], [0, 0, 1, 1], [], []>} : vector<1x128xf32>, vector<128x128xf32>, vector<1x128xf32> -> vector<1x128xf32>
    %c0_27 = arith.constant 0 : index
    %c768_28 = arith.constant 768 : index
    %55 = vector.load %arg6[%c0_27, %c768_28] : memref<1x896xf32, #tpu.memory_space<vmem>>, vector<1x128xf32>
    %56 = arith.addf %54, %55 : vector<1x128xf32>
    %cst_29 = arith.constant dense<0xFF800000> : vector<1xf32>
    %57 = vector.multi_reduction <maximumf>, %56, %cst_29 [1] : vector<1x128xf32> to vector<1xf32>
    %58 = vector.shape_cast %57 : vector<1xf32> to vector<1x1xf32>
    %59 = vector.broadcast %58 : vector<1x1xf32> to vector<1x128xf32>
    %60 = arith.subf %56, %59 : vector<1x128xf32>
    %61 = math.exp %60 : vector<1x128xf32>
    %cst_30 = arith.constant dense<0.000000e+00> : vector<1xf32>
    %62 = vector.multi_reduction <add>, %61, %cst_30 [1] : vector<1x128xf32> to vector<1xf32>
    %63 = vector.shape_cast %62 : vector<1xf32> to vector<1x1xf32>
    %64 = math.log %63 : vector<1x1xf32>
    %65 = vector.broadcast %64 : vector<1x1xf32> to vector<1x128xf32>
    %66 = arith.subf %60, %65 : vector<1x128xf32>
    %c0_31 = arith.constant 0 : index
    %c0_32 = arith.constant 0 : index
    %67 = vector.load %arg8[%c0_31, %c0_32] : memref<1x128xf32, #tpu.memory_space<vmem>>, vector<1x128xf32>
    tpu.vector_store %arg8[%c0_31, %c0_32], %52 {strides = array<i32>} : memref<1x128xf32, #tpu.memory_space<vmem>>, vector<1x128xf32>,
    %68 = tpu.concatenate %66, %52, %20 in 1 : vector<1x128xf32>, vector<1x128xf32>, vector<1x128xf32> -> vector<1x384xf32>
    %c0_33 = arith.constant 0 : index
    %c0_34 = arith.constant 0 : index
    %c0_35 = arith.constant 0 : index
    %69 = vector.load %arg7[%c0_33, %c0_34, %c0_35] : memref<1x1x384xf32, #tpu.memory_space<vmem>>, vector<1x1x384xf32>
    %70 = vector.shape_cast %69 : vector<1x1x384xf32> to vector<1x384xf32>
    %71 = vector.shape_cast %68 : vector<1x384xf32> to vector<1x1x384xf32>
    tpu.vector_store %arg7[%c0_33, %c0_34, %c0_35], %71 {strides = array<i32>} : memref<1x1x384xf32, #tpu.memory_space<vmem>>, vector<1x1x384xf32>,
    return
  }
  func.func @transform_0(%arg0: i32, %arg1: memref<8xi32, #tpu.memory_space<smem>>) -> (i32, i32, i32) {
    %0 = arith.index_cast %arg0 : i32 to index
    %1 = memref.load %arg1[%0] : memref<8xi32, #tpu.memory_space<smem>>
    %c0_i32 = arith.constant 0 : i32
    %c0_i32_0 = arith.constant 0 : i32
    %c0_i32_1 = arith.constant 0 : i32
    return %1, %c0_i32, %c0_i32_0 : i32, i32, i32
  }
  func.func @transform_1(%arg0: i32, %arg1: memref<8xi32, #tpu.memory_space<smem>>) -> (i32, i32) {
    %c0_i32 = arith.constant 0 : i32
    %c0_i32_0 = arith.constant 0 : i32
    %c0_i32_1 = arith.constant 0 : i32
    return %c0_i32, %c0_i32_0 : i32, i32
  }
  func.func @transform_2(%arg0: i32, %arg1: memref<8xi32, #tpu.memory_space<smem>>) -> (i32, i32) {
    %c0_i32 = arith.constant 0 : i32
    %c0_i32_0 = arith.constant 0 : i32
    %c0_i32_1 = arith.constant 0 : i32
    return %c0_i32, %c0_i32_0 : i32, i32
  }
  func.func @transform_3(%arg0: i32, %arg1: memref<8xi32, #tpu.memory_space<smem>>) -> (i32, i32) {
    %c0_i32 = arith.constant 0 : i32
    %c0_i32_0 = arith.constant 0 : i32
    %c0_i32_1 = arith.constant 0 : i32
    return %c0_i32, %c0_i32_0 : i32, i32
  }
  func.func @transform_4(%arg0: i32, %arg1: memref<8xi32, #tpu.memory_space<smem>>) -> (i32, i32) {
    %c0_i32 = arith.constant 0 : i32
    %c0_i32_0 = arith.constant 0 : i32
    %c0_i32_1 = arith.constant 0 : i32
    return %c0_i32, %c0_i32_0 : i32, i32
  }
  func.func @transform_5(%arg0: i32, %arg1: memref<8xi32, #tpu.memory_space<smem>>) -> (i32, i32, i32) {
    %c0_i32 = arith.constant 0 : i32
    %c0_i32_0 = arith.constant 0 : i32
    %c0_i32_1 = arith.constant 0 : i32
    return %arg0, %c0_i32, %c0_i32_0 : i32, i32, i32
  }
}

</mosaic_0001>

<bundles_post_ra>
// kernel: attn_decoder_decode.1
= control target key start
LH: loop header
LB: loop body
LE: loop exit
PB: predicated region body
PF: predicated region fallthrough
CT: control target
= control target key end

     0   :  { %s1568_s0 = inlined_call_operand.vmem [shape: s32[8], index: 0, kind: input, shape index: {}]   ;;  %s1569_s1 = inlined_call_operand.vmem [shape: f32[64,1,128], index: 1, kind: input, shape index: {}]   ;;  %s1570_s2 = inlined_call_operand.vmem [shape: f32[1,128], index: 2, kind: input, shape index: {}]   ;;  %s1571_s3 = inlined_call_operand.vmem [shape: f32[128,128], index: 3, kind: input, shape index: {}]   ;;  %s1572_s4 = inlined_call_operand.hbm [shape: f32[256,896], index: 4, kind: input, shape index: {}]   ;;  %s1573_s5 = inlined_call_operand.vmem [shape: f32[1,896], index: 5, kind: input, shape index: {}]   ;;  %s1574_s6 = inlined_call_operand.vmem [shape: f32[8,1,384], index: 6, kind: output, shape index: {}]  }
   0x1   :  { %s11_s23 = sshll.u32 %s1568_s0, 4  ;;  %s12_s23 = int_to_ptr.vmem [resolvable:$true] %s11_s23 }
   0x2   :  { %s1295_s24 = scalar_lea.vmem %s12_s23, 16  ;;  %p1300_p1 = scmp.lt.s32.totalorder %s12_s23, %s12_s23 }
   0x3   :  { %p1296_p0 = scmp.ne.s32.totalorder %s12_s23, %s1295_s24  ;;  %p1301_p2 = scmp.lt.s32.totalorder %s1295_s24, %s1295_s24 }
   0x5   :  { %p1302_p3 = por %p1301_p2, %p1300_p1 }
   0x7   :  { %p1303_p4 = pnand %p1302_p3, %p1296_p0 }
   0x9   :  { %1306 = shalt.err (!%p1303_p4)  }
   0xa   :  { %s1347_s25 = smov [#allocation4]  }
   0xb   :  { %14 = dma.vmem_to_smem %s12_s23, 16, %s1347_s25, [#allocation3] }
   0xc   :  { %1337 = dma.done.wait [#allocation3], 16 }
   0xd   :  { %1338 = vsyncadd [#allocation3], 4294967280 }
   0xe   :  { %16 = sfence }
   0xf   :  { %17 = vsyncpa [#allocation6], 0  ;;  %s1392_s26 = smov 0  }
  0x10 LB: > { %s1398_s0 = sadd.s32 4294967295, %s1345_s26   ;;  %p1066_p5 = scmp.ge.s32.totalorder %s1345_s26, 1  ;;  %s1345_s26 = sphi %s1392_s26, %s23_s26  }
  0x11   : > { %p166_p6 = scmp.lt.s32.totalorder %s1345_s26, 9  ;;  %s1348_s27 = smov [#allocation5]  }
  0x12   : > { %s184_s28 = sshll.u32 %s1348_s27, 4  ;;  %p1259_p9 = scmp.eq.s32.totalorder %s1398_s0, 0  ;;  %s185_s28 = int_to_ptr.vmem [resolvable:$true] %s184_s28 }
  0x13   : > { %p1403_p8 = pnand %p1066_p5, %p166_p6  ;;  %s1318_s30 = scalar_lea.vmem %s185_s28, 28672 }
  0x14   : > { %p1319_p13 = scmp.ne.s32.totalorder %s185_s28, %s1318_s30  ;;  %p1326_p2 = scmp.lt.s32.totalorder %s185_s28, %s185_s28 }
  0x15   : > { %p1255_p10 = pneg %p1403_p8  ;;  %p1327_p3 = scmp.lt.s32.totalorder %s1318_s30, %s1318_s30 }
  0x17   : > { %p1256_p11 = pnand %p1259_p9, %p1255_p10  ;;  %p1328_p4 = por %p1327_p3, %p1326_p2 }
  0x19   : > { %p1309_p12 = pneg %p1256_p11 }
  0x1b   : > { %p1321_p0 = pnand %p1319_p13, %p1309_p12 }
  0x1d   : > { %p1322_p1 = pneg %p1321_p0 }
  0x1f   : > { %p1329_p7 = pnand %p1328_p4, %p1322_p1 }
  0x21   : > { %1332 = shalt.err (!%p1329_p7)
}
  0x22   : > { %s1349_s7 = smov 896   ;;  %s1350_s8 = smov 56  }
  0x23   : > { %1258 = dma.hbm_to_vmem [thread:$0]  (!%p1256_p11), %s1572_s4, 28672, %s185_s28, [#allocation6], %s1349_s7, %s1349_s7, %s1350_s8  }
  0x24   : > { %211 = sbr.rel (%p1403_p8) target bundleno = 1760 (0x6e0), region = 40 }
  0x29   : > { %1340 = dma.done.wait (%p1259_p9), [#allocation6], 28672  }
  0x2a   : > { %1342 = vsyncadd (%p1259_p9), [#allocation6], 4294938624  ;;  %p242_p5 = scmp.lt.s32.totalorder %s1398_s0, 7  ;;  %s237_s11 = sld [smem:[#allocation4 + %s1398_s0]] }
  0x2b   : > { %p1576_p7 = scmp.ne.s32.totalorder %s1398_s0, 0 }
  0x2c   : > { %s243_s12 = scalar_select %p242_p5, %s1398_s0, 7 }
  0x2e   : > { %s1250_s13 = smul.u32 3, %s243_s12 }
  0x2f   : > { %249 = sbr.rel (%p1576_p7) target bundleno = 54 (0x36), region = 48 }
  0x30   : > { %s1427_s16 = scalar_lea.vmem %s1574_s6, %s1250_s13  ;;  %p238_p6 = scmp.lt.s32.totalorder %s237_s11, 63 }
  0x32   : > { %s1578_s11 = smov (!%p238_p6, %s237_s11), 63 }
  0x33   : > { %s240_s19 = scalar_lea.vmem %s1569_s1, %s1578_s11 }
  0x34   : > { %v250_v0 = vld [vmem:[%s1570_s2] sm:$0x1] }
  0x35   : > { %251 = vst [vmem:[#allocation2] sm:$0x1] %v250_v0 }
  0x36 PF: > { %v285_v1 = vld [vmem:[#allocation5 + $0x6c8] sm:$0xff]  ;;  %v284_v3 = vld [vmem:[#allocation5 + $0x690] sm:$0xff]  ;;  %v283_v5 = vld [vmem:[#allocation5 + $0x658] sm:$0xff]  ;;  %vm357_vm0 = vcmask 1040384   ;;  %v1351_v42 = vmov 0.0   ;;  %vm1352_vm1 = vmmov 0  }
  0x37   : > { %v269_v2 = vld [vmem:[#allocation5 + $0x348] sm:$0xff]  ;;  %1076 = vmatprep.subr.mxu0 %v285_v1  ;;  %v268_v4 = vld [vmem:[#allocation5 + $0x310] sm:$0xff]  ;;  %v267_v6 = vld [vmem:[#allocation5 + $0x2d8] sm:$0xff]  ;;  %1180 = vmatprep.subr.mxu1 %v1351_v42 }
  0x38   : > { %1077 = vmatpush3.msra.mxu0 %v269_v2  ;;  %v282_v7 = vld [vmem:[#allocation5 + $0x620] sm:$0xff]  ;;  %v281_v9 = vld [vmem:[#allocation5 + $0x5e8] sm:$0xff]  ;;  %v280_v11 = vld [vmem:[#allocation5 + $0x5b0] sm:$0xff]  ;;  %1212 = vmatprep.mubr.msk.f32.mxu1 %vm1352_vm1, %v1351_v42 }
  0x39   : > { %1078 = vmatprep.subr.mxu0 %v284_v3  ;;  %v266_v8 = vld [vmem:[#allocation5 + $0x2a0] sm:$0xff]  ;;  %v265_v10 = vld [vmem:[#allocation5 + $0x268] sm:$0xff]  ;;  %v264_v12 = vld [vmem:[#allocation5 + $0x230] sm:$0xff] }
  0x3a   : > { %1079 = vmatpush3.msra.mxu0 %v268_v4  ;;  %v279_v13 = vld [vmem:[#allocation5 + $0x578] sm:$0xff]  ;;  %v278_v16 = vld [vmem:[#allocation5 + $0x540] sm:$0xff]  ;;  %v277_v18 = vld [vmem:[#allocation5 + $0x508] sm:$0xff] }
  0x3b   : > { %1080 = vmatprep.subr.mxu0 %v283_v5  ;;  %v263_v15 = vld [vmem:[#allocation5 + $0x1f8] sm:$0xff]  ;;  %v262_v17 = vld [vmem:[#allocation5 + $0x1c0] sm:$0xff]  ;;  %v261_v19 = vld [vmem:[#allocation5 + $0x188] sm:$0xff] }
  0x3c   : > { %1081 = vmatpush3.msra.mxu0 %v267_v6  ;;  %v1440_v14 = vld [vmem:[#allocation2] sm:$0x1]  ;;  %v276_v20 = vld [vmem:[#allocation5 + $0x4d0] sm:$0xff]  ;;  %v274_v24 = vld [vmem:[#allocation5 + $0x460] sm:$0xff] }
  0x3d   : > { %1082 = vmatprep.subr.mxu0 %v282_v7  ;;  %351 = vmatprep.mubr.f32.mxu0 %v1440_v14  ;;  %v260_v21 = vld [vmem:[#allocation5 + $0x150] sm:$0xff]  ;;  %v275_v22 = vld [vmem:[#allocation5 + $0x498] sm:$0xff]  ;;  %v258_v25 = vld [vmem:[#allocation5 + $0xe0] sm:$0xff] }
  0x3e   : > { %1083 = vmatpush3.msra.mxu0 %v266_v8  ;;  %v259_v23 = vld [vmem:[#allocation5 + $0x118] sm:$0xff]  ;;  %v273_v26 = vld [vmem:[#allocation5 + $0x428] sm:$0xff]  ;;  %v272_v28 = vld [vmem:[#allocation5 + $0x3f0] sm:$0xff] }
  0x3f   : > { %1084 = vmatprep.subr.mxu0 %v281_v9  ;;  %v257_v27 = vld [vmem:[#allocation5 + $0xa8] sm:$0xff]  ;;  %v256_v29 = vld [vmem:[#allocation5 + $0x70] sm:$0xff]  ;;  %v271_v30 = vld [vmem:[#allocation5 + $0x3b8] sm:$0xff] }
  0x40   : > { %1085 = vmatpush3.msra.mxu0 %v265_v10  ;;  %v255_v31 = vld [vmem:[#allocation5 + $0x38] sm:$0xff]  ;;  %v270_v32 = vld [vmem:[#allocation5 + $0x380] sm:$0xff]  ;;  %v383_v43 = vld [vmem:[%s1571_s3 + $0x70] sm:$0xff] }
  0x41   : > { %1086 = vmatprep.subr.mxu0 %v280_v11  ;;  %v254_v33 = vld [vmem:[#allocation5] sm:$0xff]  ;;  %v1448_v34 = vld [vmem:[%s240_s19] sm:$0x1]  ;;  %v384_v41 = vld [vmem:[%s1571_s3 + $0x78] sm:$0xff] }
  0x42   : > { %1087 = vmatpush3.msra.mxu0 %v264_v12  ;;  %v286_v37 = vld [vmem:[%s1573_s5] sm:$0x1]  ;;  %1181 = vmatpush3.msra.mxu1 %v384_v41  ;;  %v382_v44 = vld [vmem:[%s1571_s3 + $0x68] sm:$0xff]  ;;  %v380_v46 = vld [vmem:[%s1571_s3 + $0x58] sm:$0xff] }
  0x43   : > { %1088 = vmatprep.subr.mxu0 %v279_v13  ;;  %1182 = vmatprep.subr.mxu1 %v1351_v42  ;;  %v381_v45 = vld [vmem:[%s1571_s3 + $0x60] sm:$0xff]  ;;  %v379_v47 = vld [vmem:[%s1571_s3 + $0x50] sm:$0xff]  ;;  %v378_v48 = vld [vmem:[%s1571_s3 + $0x48] sm:$0xff] }
  0x44   : > { %1089 = vmatpush3.msra.mxu0 %v263_v15  ;;  %1183 = vmatpush3.msra.mxu1 %v383_v43  ;;  %v377_v49 = vld [vmem:[%s1571_s3 + $0x40] sm:$0xff]  ;;  %v376_v55 = vld [vmem:[%s1571_s3 + $0x38] sm:$0xff]  ;;  %v375_v56 = vld [vmem:[%s1571_s3 + $0x30] sm:$0xff] }
  0x45   : > { %1090 = vmatprep.subr.mxu0 %v278_v16  ;;  %1184 = vmatprep.subr.mxu1 %v1351_v42  ;;  %v374_v57 = vld [vmem:[%s1571_s3 + $0x28] sm:$0xff]  ;;  %v373_v58 = vld [vmem:[%s1571_s3 + $0x20] sm:$0xff]  ;;  %v372_v59 = vld [vmem:[%s1571_s3 + $0x18] sm:$0xff] }
  0x46   : > { %1091 = vmatpush3.msra.mxu0 %v262_v17  ;;  %1185 = vmatpush3.msra.mxu1 %v382_v44  ;;  %v371_v60 = vld [vmem:[%s1571_s3 + $0x10] sm:$0xff]  ;;  %v370_v61 = vld [vmem:[%s1571_s3 + $0x8] sm:$0xff]  ;;  %v369_v62 = vld [vmem:[%s1571_s3] sm:$0xff] }
  0x47   : > { %1092 = vmatprep.subr.mxu0 %v277_v18  ;;  %1186 = vmatprep.subr.mxu1 %v1351_v42  ;;  %v486_v63 = vld [vmem:[#allocation5 + $0x6d0] sm:$0xff]  ;;  %v485_v1 = vld [vmem:[#allocation5 + $0x698] sm:$0xff]  ;;  %v484_v3 = vld [vmem:[#allocation5 + $0x660] sm:$0xff] }
  0x48   : > { %1093 = vmatpush3.msra.mxu0 %v261_v19  ;;  %1187 = vmatpush3.msra.mxu1 %v381_v45  ;;  %v470_v0 = vld [vmem:[#allocation5 + $0x350] sm:$0xff]  ;;  %v469_v2 = vld [vmem:[#allocation5 + $0x318] sm:$0xff]  ;;  %v468_v4 = vld [vmem:[#allocation5 + $0x2e0] sm:$0xff] }
  0x49   : > { %1094 = vmatprep.subr.mxu0 %v276_v20  ;;  %1188 = vmatprep.subr.mxu1 %v1351_v42  ;;  %v483_v5 = vld [vmem:[#allocation5 + $0x628] sm:$0xff]  ;;  %v482_v7 = vld [vmem:[#allocation5 + $0x5f0] sm:$0xff]  ;;  %v481_v9 = vld [vmem:[#allocation5 + $0x5b8] sm:$0xff] }
  0x4a   : > { %1095 = vmatpush3.msra.mxu0 %v260_v21  ;;  %1189 = vmatpush3.msra.mxu1 %v380_v46  ;;  %v467_v6 = vld [vmem:[#allocation5 + $0x2a8] sm:$0xff]  ;;  %v466_v8 = vld [vmem:[#allocation5 + $0x270] sm:$0xff]  ;;  %v465_v10 = vld [vmem:[#allocation5 + $0x238] sm:$0xff] }
  0x4b   : > { %1096 = vmatprep.subr.mxu0 %v275_v22  ;;  %1190 = vmatprep.subr.mxu1 %v1351_v42  ;;  %v480_v11 = vld [vmem:[#allocation5 + $0x580] sm:$0xff]  ;;  %v479_v13 = vld [vmem:[#allocation5 + $0x548] sm:$0xff]  ;;  %v478_v16 = vld [vmem:[#allocation5 + $0x510] sm:$0xff] }
  0x4c   : > { %1097 = vmatpush3.msra.mxu0 %v259_v23  ;;  %1191 = vmatpush3.msra.mxu1 %v379_v47  ;;  %v464_v12 = vld [vmem:[#allocation5 + $0x200] sm:$0xff]  ;;  %v463_v15 = vld [vmem:[#allocation5 + $0x1c8] sm:$0xff]  ;;  %v462_v17 = vld [vmem:[#allocation5 + $0x190] sm:$0xff] }
  0x4d   : > { %1098 = vmatprep.subr.mxu0 %v274_v24  ;;  %1192 = vmatprep.subr.mxu1 %v1351_v42  ;;  %v477_v18 = vld [vmem:[#allocation5 + $0x4d8] sm:$0xff]  ;;  %v476_v20 = vld [vmem:[#allocation5 + $0x4a0] sm:$0xff]  ;;  %v475_v22 = vld [vmem:[#allocation5 + $0x468] sm:$0xff] }
  0x4e   : > { %1099 = vmatpush3.msra.mxu0 %v258_v25  ;;  %1193 = vmatpush3.msra.mxu1 %v378_v48  ;;  %v461_v19 = vld [vmem:[#allocation5 + $0x158] sm:$0xff]  ;;  %v460_v21 = vld [vmem:[#allocation5 + $0x120] sm:$0xff]  ;;  %v459_v23 = vld [vmem:[#allocation5 + $0xe8] sm:$0xff] }
  0x4f   : > { %1100 = vmatprep.subr.mxu0 %v273_v26  ;;  %1194 = vmatprep.subr.mxu1 %v1351_v42  ;;  %v474_v24 = vld [vmem:[#allocation5 + $0x430] sm:$0xff]  ;;  %v473_v26 = vld [vmem:[#allocation5 + $0x3f8] sm:$0xff]  ;;  %v611_v43 = vld [vmem:[#allocation5 + $0x2e8] sm:$0xff] }
  0x50   : > { %1101 = vmatpush3.msra.mxu0 %v257_v27  ;;  %1195 = vmatpush3.msra.mxu1 %v377_v49  ;;  %v458_v25 = vld [vmem:[#allocation5 + $0xb0] sm:$0xff]  ;;  %v457_v27 = vld [vmem:[#allocation5 + $0x78] sm:$0xff]  ;;  %v604_v46 = vld [vmem:[#allocation5 + $0x280] sm:$0xff] }
  0x51   : > { %1102 = vmatprep.subr.mxu0 %v272_v28  ;;  %1196 = vmatprep.subr.mxu1 %v1351_v42  ;;  %v472_v28 = vld [vmem:[#allocation5 + $0x3c0] sm:$0xff]  ;;  %v612_v41 = vld [vmem:[#allocation5 + $0x2f0] sm:$0xff]  ;;  %v608_v44 = vld [vmem:[#allocation5 + $0x2b8] sm:$0xff] }
  0x52   : > { %1103 = vmatpush3.msra.mxu0 %v256_v29  ;;  %1197 = vmatpush3.msra.mxu1 %v376_v55  ;;  %v456_v29 = vld [vmem:[#allocation5 + $0x40] sm:$0xff]  ;;  %v607_v45 = vld [vmem:[#allocation5 + $0x2b0] sm:$0xff]  ;;  %v603_v47 = vld [vmem:[#allocation5 + $0x278] sm:$0xff] }
  0x53   : > { %1104 = vmatprep.subr.mxu0 %v271_v30  ;;  %1198 = vmatprep.subr.mxu1 %v1351_v42  ;;  %v600_v48 = vld [vmem:[#allocation5 + $0x248] sm:$0xff]  ;;  %v599_v49 = vld [vmem:[#allocation5 + $0x240] sm:$0xff]  ;;  %v587_v55 = vld [vmem:[#allocation5 + $0x198] sm:$0xff] }
  0x54   : > { %1105 = vmatpush3.msra.mxu0 %v255_v31  ;;  %1199 = vmatpush3.msra.mxu1 %v375_v56  ;;  %v584_v56 = vld [vmem:[#allocation5 + $0x168] sm:$0xff] }
  0x55   : > { %1106 = vmatprep.subr.mxu0 %v270_v32  ;;  %1200 = vmatprep.subr.mxu1 %v1351_v42 }
  0x56   : > { %1107 = vmatpush3.msra.mxu0 %v254_v33  ;;  %1201 = vmatpush3.msra.mxu1 %v374_v57  ;;  %v471_v33 = vld [vmem:[#allocation5 + $0x388] sm:$0xff]  ;;  %v583_v57 = vld [vmem:[#allocation5 + $0x160] sm:$0xff] }
  0x57   : > { %352 = vmatmul.mubr.f32.vlgmr.msra.gmra.mxu0 %v1448_v34  ;;  %1202 = vmatprep.subr.mxu1 %v1351_v42 }
  0x58   : > { %1203 = vmatpush3.msra.mxu1 %v373_v58  ;;  %1128 = vmatprep.subr.mxu0 %v486_v63  ;;  %v580_v58 = vld [vmem:[#allocation5 + $0x130] sm:$0xff]  ;;  %v571_v63 = vld [vmem:[#allocation5 + $0xb8] sm:$0xff] }
  0x59   : > { %1204 = vmatprep.subr.mxu1 %v1351_v42  ;;  %1129 = vmatpush3.msra.mxu0 %v470_v0  ;;  %v568_v0 = vld [vmem:[#allocation5 + $0x88] sm:$0xff] }
  0x5a   : > { %1205 = vmatpush3.msra.mxu1 %v372_v59  ;;  %1130 = vmatprep.subr.mxu0 %v485_v1  ;;  %v579_v59 = vld [vmem:[#allocation5 + $0x128] sm:$0xff]  ;;  %v567_v1 = vld [vmem:[#allocation5 + $0x80] sm:$0xff] }
  0x5b   : > { %1206 = vmatprep.subr.mxu1 %v1351_v42  ;;  %1131 = vmatpush3.msra.mxu0 %v469_v2  ;;  %v564_v2 = vld [vmem:[#allocation5 + $0x50] sm:$0xff] }
  0x5c   : > { %1207 = vmatpush3.msra.mxu1 %v371_v60  ;;  %1132 = vmatprep.subr.mxu0 %v484_v3  ;;  %v576_v60 = vld [vmem:[#allocation5 + $0xf8] sm:$0xff]  ;;  %v563_v3 = vld [vmem:[#allocation5 + $0x48] sm:$0xff] }
  0x5d   : > { %1208 = vmatprep.subr.mxu1 %v1351_v42  ;;  %1133 = vmatpush3.msra.mxu0 %v468_v4  ;;  %v560_v4 = vld [vmem:[#allocation5 + $0x18] sm:$0xff] }
  0x5e   : > { %1209 = vmatpush3.msra.mxu1 %v370_v61  ;;  %1134 = vmatprep.subr.mxu0 %v483_v5  ;;  %v575_v61 = vld [vmem:[#allocation5 + $0xf0] sm:$0xff] }
  0x5f   : > { %1210 = vmatprep.subr.mxu1 %v1351_v42  ;;  %1135 = vmatpush3.msra.mxu0 %v467_v6  ;;  %v559_v5 = vld [vmem:[#allocation5 + $0x10] sm:$0xff]  ;;  %v684_v6 = vld [vmem:[#allocation5 + $0x6e0] sm:$0xff] }
  0x60   : > { %1211 = vmatpush3.msra.mxu1 %v369_v62  ;;  %1136 = vmatprep.subr.mxu0 %v482_v7  ;;  %v572_v62 = vld [vmem:[#allocation5 + $0xc0] sm:$0xff]  ;;  %v683_v7 = vld [vmem:[#allocation5 + $0x6d8] sm:$0xff] }
  0x61   : > { %1137 = vmatpush3.msra.mxu0 %v466_v8  ;;  %v680_v8 = vld [vmem:[#allocation5 + $0x6a8] sm:$0xff] }
  0x62   : > { %1138 = vmatprep.subr.mxu0 %v481_v9  ;;  %v679_v9 = vld [vmem:[#allocation5 + $0x6a0] sm:$0xff] }
  0x63   : > { %1139 = vmatpush3.msra.mxu0 %v465_v10  ;;  %v676_v10 = vld [vmem:[#allocation5 + $0x670] sm:$0xff] }
  0x64   : > { %1140 = vmatprep.subr.mxu0 %v480_v11  ;;  %v675_v11 = vld [vmem:[#allocation5 + $0x668] sm:$0xff] }
  0x65   : > { %1141 = vmatpush3.msra.mxu0 %v464_v12  ;;  %v672_v12 = vld [vmem:[#allocation5 + $0x638] sm:$0xff] }
  0x66   : > { %1142 = vmatprep.subr.mxu0 %v479_v13  ;;  %v671_v13 = vld [vmem:[#allocation5 + $0x630] sm:$0xff] }
  0x67   : > { %1143 = vmatpush3.msra.mxu0 %v463_v15  ;;  %v668_v15 = vld [vmem:[#allocation5 + $0x600] sm:$0xff] }
  0x68   : > { %1144 = vmatprep.subr.mxu0 %v478_v16  ;;  %v667_v16 = vld [vmem:[#allocation5 + $0x5f8] sm:$0xff] }
  0x69   : > { %1145 = vmatpush3.msra.mxu0 %v462_v17  ;;  %v664_v17 = vld [vmem:[#allocation5 + $0x5c8] sm:$0xff] }
  0x6a   : > { %1146 = vmatprep.subr.mxu0 %v477_v18  ;;  %v663_v18 = vld [vmem:[#allocation5 + $0x5c0] sm:$0xff] }
  0x6b   : > { %1147 = vmatpush3.msra.mxu0 %v461_v19  ;;  %v660_v19 = vld [vmem:[#allocation5 + $0x590] sm:$0xff] }
  0x6c   : > { %1148 = vmatprep.subr.mxu0 %v476_v20  ;;  %v659_v20 = vld [vmem:[#allocation5 + $0x588] sm:$0xff] }
  0x6d   : > { %1149 = vmatpush3.msra.mxu0 %v460_v21  ;;  %v656_v21 = vld [vmem:[#allocation5 + $0x558] sm:$0xff] }
  0x6e   : > { %1150 = vmatprep.subr.mxu0 %v475_v22  ;;  %v655_v22 = vld [vmem:[#allocation5 + $0x550] sm:$0xff] }
  0x6f   : > { %1151 = vmatpush3.msra.mxu0 %v459_v23  ;;  %v652_v23 = vld [vmem:[#allocation5 + $0x520] sm:$0xff] }
  0x70   : > { %1152 = vmatprep.subr.mxu0 %v474_v24  ;;  %v651_v24 = vld [vmem:[#allocation5 + $0x518] sm:$0xff] }
  0x71   : > { %1153 = vmatpush3.msra.mxu0 %v458_v25  ;;  %v648_v25 = vld [vmem:[#allocation5 + $0x4e8] sm:$0xff] }
  0x72   : > { %1154 = vmatprep.subr.mxu0 %v473_v26  ;;  %v647_v26 = vld [vmem:[#allocation5 + $0x4e0] sm:$0xff] }
  0x73   : > { %1155 = vmatpush3.msra.mxu0 %v457_v27  ;;  %v644_v27 = vld [vmem:[#allocation5 + $0x4b0] sm:$0xff] }
  0x74   : > { %1156 = vmatprep.subr.mxu0 %v472_v28  ;;  %v643_v28 = vld [vmem:[#allocation5 + $0x4a8] sm:$0xff] }
  0x75   : > { %1157 = vmatpush3.msra.mxu0 %v456_v29  ;;  %v640_v29 = vld [vmem:[#allocation5 + $0x478] sm:$0xff] }
  0x76   : > { %1158 = vmatprep.subr.mxu0 %v471_v33  ;;  %v618_v33 = vld [vmem:[#allocation5 + $0x338] sm:$0xff] }
 0x117   : > { %v1108_v35 = vpop.f32.mrf.mxu0 }
 0x119   : > { %v1109_v36 = vpop.f32.mrf.mxu0 }
 0x11a   : > { %v1110_v38 = vadd.f32 %v1109_v36, %v1108_v35  ;;  %v455_v35 = vld [vmem:[#allocation5 + $0x8] sm:$0xff]  ;;  %v620_v36 = vld [vmem:[#allocation5 + $0x360] sm:$0xff] }
 0x11b   : > { %1159 = vmatpush3.msra.mxu0 %v455_v35  ;;  %709 = vmatprep.subr.mxu1 %v620_v36  ;;  %v617_v36 = vld [vmem:[#allocation5 + $0x330] sm:$0xff] }
 0x11c   : > { %v354_v39 = vadd.f32 %v1110_v38, %v286_v37  ;;  %v622_v37 = vld [vmem:[#allocation5 + $0x370] sm:$0xff]  ;;  %v619_v38 = vld [vmem:[#allocation5 + $0x358] sm:$0xff] }
 0x11d   : > { %780 = vmatprep.subr.mxu0 %v622_v37  ;;  %v614_v37 = vld [vmem:[#allocation5 + $0x300] sm:$0xff] }
 0x11e   : > { %v358_v40 = vsel %vm357_vm0, %v354_v39, -inf }
 0x11f   : > { %359 = vmax.xlane.f32.xlu0 %v358_v40  ;;  %v615_v40 = vld [vmem:[#allocation5 + $0x320] sm:$0xff] }
 0x1a8   : > { %v360_v50 = vpop.xlane.xlu0 %359 }
 0x1a9   : > { %v361_v51 = vsub.f32 %v354_v39, %v360_v50  ;;  %v616_v39 = vld [vmem:[#allocation5 + $0x328] sm:$0xff]  ;;  %v596_v50 = vld [vmem:[#allocation5 + $0x210] sm:$0xff] }
 0x1ab   : > { %v362_v52 = vmul.f32 1.442695, %v361_v51  ;;  %v595_v51 = vld [vmem:[#allocation5 + $0x208] sm:$0xff] }
 0x1ad   : > { %1276 = vpow2.f32 %v362_v52  ;;  %v592_v52 = vld [vmem:[#allocation5 + $0x1d8] sm:$0xff] }
 0x1ba   : > { %v1488_v53 = vpop.eup %1276 }
 0x1bb   : > { %v364_v54 = vsel %vm357_vm0, %v1488_v53, 0.0 }
 0x1bc   : > { %365 = vadd.xlane.f32.xlu0 %v364_v54  ;;  %v588_v54 = vld [vmem:[#allocation5 + $0x1a0] sm:$0xff] }
 0x245   : > { %v366_v30 = vpop.xlane.xlu0 %365 }
 0x246   : > { %1278 = vrcp.f32 %v366_v30 }
 0x253   : > { %v1279_v31 = vpop.eup %1278 }
 0x254   : > { %v1526_v32 = vmul.f32 %v1279_v31, %v1488_v53  ;;  %v591_v53 = vld [vmem:[#allocation5 + $0x1d0] sm:$0xff]  ;;  %v621_v31 = vld [vmem:[#allocation5 + $0x368] sm:$0xff] }
 0x256   : > { %1213 = vmatmul.mubr.f32.vlgmr.msra.gmra.mxu1 %v1526_v32 }
 0x257   : > { %773 = vmatprep.mubr.f32.mxu1 %v1440_v14  ;;  %710 = vmatpush1.msra.mxu1 %v619_v38  ;;  %v613_v38 = vld [vmem:[#allocation5 + $0x2f8] sm:$0xff] }
 0x258   : > { %711 = vmatprep.subr.mxu1 %v616_v39  ;;  %v610_v39 = vld [vmem:[#allocation5 + $0x2c8] sm:$0xff] }
 0x259   : > { %712 = vmatpush1.msra.mxu1 %v615_v40  ;;  %v609_v40 = vld [vmem:[#allocation5 + $0x2c0] sm:$0xff] }
 0x25a   : > { %713 = vmatprep.subr.mxu1 %v612_v41  ;;  %v606_v41 = vld [vmem:[#allocation5 + $0x290] sm:$0xff] }
 0x25b   : > { %714 = vmatpush1.msra.mxu1 %v611_v43  ;;  %v605_v43 = vld [vmem:[#allocation5 + $0x288] sm:$0xff] }
 0x25c   : > { %715 = vmatprep.subr.mxu1 %v608_v44  ;;  %v602_v44 = vld [vmem:[#allocation5 + $0x258] sm:$0xff] }
 0x25d   : > { %716 = vmatpush1.msra.mxu1 %v607_v45  ;;  %v601_v45 = vld [vmem:[#allocation5 + $0x250] sm:$0xff] }
 0x25e   : > { %717 = vmatprep.subr.mxu1 %v604_v46  ;;  %v597_v46 = vld [vmem:[#allocation5 + $0x218] sm:$0xff] }
 0x25f   : > { %718 = vmatpush1.msra.mxu1 %v603_v47  ;;  %v593_v47 = vld [vmem:[#allocation5 + $0x1e0] sm:$0xff] }
 0x260   : > { %719 = vmatprep.subr.mxu1 %v600_v48  ;;  %v590_v48 = vld [vmem:[#allocation5 + $0x1b0] sm:$0xff] }
 0x261   : > { %720 = vmatpush1.msra.mxu1 %v599_v49  ;;  %v589_v49 = vld [vmem:[#allocation5 + $0x1a8] sm:$0xff] }
 0x262   : > { %721 = vmatprep.subr.mxu1 %v596_v50  ;;  %v586_v50 = vld [vmem:[#allocation5 + $0x178] sm:$0xff] }
 0x263   : > { %722 = vmatpush1.msra.mxu1 %v595_v51  ;;  %v585_v51 = vld [vmem:[#allocation5 + $0x170] sm:$0xff] }
 0x264   : > { %723 = vmatprep.subr.mxu1 %v592_v52  ;;  %v582_v52 = vld [vmem:[#allocation5 + $0x140] sm:$0xff] }
 0x265   : > { %724 = vmatpush1.msra.mxu1 %v591_v53  ;;  %v581_v53 = vld [vmem:[#allocation5 + $0x138] sm:$0xff] }
 0x266   : > { %725 = vmatprep.subr.mxu1 %v588_v54  ;;  %v578_v54 = vld [vmem:[#allocation5 + $0x108] sm:$0xff] }
 0x267   : > { %726 = vmatpush1.msra.mxu1 %v587_v55  ;;  %v577_v55 = vld [vmem:[#allocation5 + $0x100] sm:$0xff] }
 0x268   : > { %727 = vmatprep.subr.mxu1 %v584_v56  ;;  %v574_v56 = vld [vmem:[#allocation5 + $0xd0] sm:$0xff] }
 0x269   : > { %728 = vmatpush1.msra.mxu1 %v583_v57  ;;  %v573_v57 = vld [vmem:[#allocation5 + $0xc8] sm:$0xff] }
 0x26a   : > { %729 = vmatprep.subr.mxu1 %v580_v58  ;;  %v570_v58 = vld [vmem:[#allocation5 + $0x98] sm:$0xff] }
 0x26b   : > { %730 = vmatpush1.msra.mxu1 %v579_v59  ;;  %v569_v59 = vld [vmem:[#allocation5 + $0x90] sm:$0xff] }
 0x26c   : > { %731 = vmatprep.subr.mxu1 %v576_v60  ;;  %v566_v60 = vld [vmem:[#allocation5 + $0x60] sm:$0xff] }
 0x26d   : > { %732 = vmatpush1.msra.mxu1 %v575_v61  ;;  %v565_v61 = vld [vmem:[#allocation5 + $0x58] sm:$0xff] }
 0x26e   : > { %733 = vmatprep.subr.mxu1 %v572_v62  ;;  %v562_v62 = vld [vmem:[#allocation5 + $0x28] sm:$0xff] }
 0x26f   : > { %734 = vmatpush1.msra.mxu1 %v571_v63  ;;  %v561_v63 = vld [vmem:[#allocation5 + $0x20] sm:$0xff] }
 0x270   : > { %735 = vmatprep.subr.mxu1 %v568_v0  ;;  %v686_v0 = vld [vmem:[#allocation5 + $0x6f0] sm:$0xff] }
 0x271   : > { %736 = vmatpush1.msra.mxu1 %v567_v1  ;;  %v685_v1 = vld [vmem:[#allocation5 + $0x6e8] sm:$0xff] }
 0x272   : > { %737 = vmatprep.subr.mxu1 %v564_v2  ;;  %v682_v2 = vld [vmem:[#allocation5 + $0x6b8] sm:$0xff] }
 0x273   : > { %738 = vmatpush1.msra.mxu1 %v563_v3  ;;  %v681_v3 = vld [vmem:[#allocation5 + $0x6b0] sm:$0xff] }
 0x274   : > { %739 = vmatprep.subr.mxu1 %v560_v4  ;;  %v678_v4 = vld [vmem:[#allocation5 + $0x680] sm:$0xff] }
 0x275   : > { %740 = vmatpush1.msra.mxu1 %v559_v5  ;;  %v677_v5 = vld [vmem:[#allocation5 + $0x678] sm:$0xff] }
 0x276   : > { %741 = vmatprep.subr.mxu1 %v684_v6  ;;  %v674_v6 = vld [vmem:[#allocation5 + $0x648] sm:$0xff] }
 0x277   : > { %742 = vmatpush2.msra.mxu1 %v683_v7  ;;  %v673_v7 = vld [vmem:[#allocation5 + $0x640] sm:$0xff] }
 0x278   : > { %743 = vmatprep.subr.mxu1 %v680_v8  ;;  %v670_v8 = vld [vmem:[#allocation5 + $0x610] sm:$0xff] }
 0x279   : > { %744 = vmatpush2.msra.mxu1 %v679_v9  ;;  %v669_v9 = vld [vmem:[#allocation5 + $0x608] sm:$0xff] }
 0x27a   : > { %745 = vmatprep.subr.mxu1 %v676_v10  ;;  %v666_v10 = vld [vmem:[#allocation5 + $0x5d8] sm:$0xff] }
 0x27b   : > { %746 = vmatpush2.msra.mxu1 %v675_v11  ;;  %v665_v11 = vld [vmem:[#allocation5 + $0x5d0] sm:$0xff] }
 0x27c   : > { %747 = vmatprep.subr.mxu1 %v672_v12  ;;  %v662_v12 = vld [vmem:[#allocation5 + $0x5a0] sm:$0xff] }
 0x27d   : > { %748 = vmatpush2.msra.mxu1 %v671_v13  ;;  %v661_v13 = vld [vmem:[#allocation5 + $0x598] sm:$0xff] }
 0x27e   : > { %749 = vmatprep.subr.mxu1 %v668_v15  ;;  %v658_v15 = vld [vmem:[#allocation5 + $0x568] sm:$0xff] }
 0x27f   : > { %750 = vmatpush2.msra.mxu1 %v667_v16  ;;  %v657_v16 = vld [vmem:[#allocation5 + $0x560] sm:$0xff] }
 0x280   : > { %751 = vmatprep.subr.mxu1 %v664_v17  ;;  %v654_v17 = vld [vmem:[#allocation5 + $0x530] sm:$0xff] }
 0x281   : > { %752 = vmatpush2.msra.mxu1 %v663_v18  ;;  %v653_v18 = vld [vmem:[#allocation5 + $0x528] sm:$0xff] }
 0x282   : > { %753 = vmatprep.subr.mxu1 %v660_v19  ;;  %v650_v19 = vld [vmem:[#allocation5 + $0x4f8] sm:$0xff] }
 0x283   : > { %754 = vmatpush2.msra.mxu1 %v659_v20  ;;  %v649_v20 = vld [vmem:[#allocation5 + $0x4f0] sm:$0xff] }
 0x284   : > { %755 = vmatprep.subr.mxu1 %v656_v21  ;;  %v646_v21 = vld [vmem:[#allocation5 + $0x4c0] sm:$0xff] }
 0x285   : > { %756 = vmatpush2.msra.mxu1 %v655_v22  ;;  %v645_v22 = vld [vmem:[#allocation5 + $0x4b8] sm:$0xff] }
 0x286   : > { %757 = vmatprep.subr.mxu1 %v652_v23  ;;  %v642_v23 = vld [vmem:[#allocation5 + $0x488] sm:$0xff] }
 0x287   : > { %758 = vmatpush2.msra.mxu1 %v651_v24  ;;  %v639_v24 = vld [vmem:[#allocation5 + $0x470] sm:$0xff] }
 0x288   : > { %759 = vmatprep.subr.mxu1 %v648_v25  ;;  %v641_v25 = vld [vmem:[#allocation5 + $0x480] sm:$0xff] }
 0x289   : > { %760 = vmatpush2.msra.mxu1 %v647_v26  ;;  %v636_v26 = vld [vmem:[#allocation5 + $0x440] sm:$0xff] }
 0x28a   : > { %761 = vmatprep.subr.mxu1 %v644_v27  ;;  %v638_v27 = vld [vmem:[#allocation5 + $0x450] sm:$0xff] }
 0x28b   : > { %762 = vmatpush2.msra.mxu1 %v643_v28  ;;  %v635_v28 = vld [vmem:[#allocation5 + $0x438] sm:$0xff] }
 0x28c   : > { %763 = vmatprep.subr.mxu1 %v640_v29  ;;  %v637_v29 = vld [vmem:[#allocation5 + $0x448] sm:$0xff] }
 0x28d   : > { %764 = vmatpush2.msra.mxu1 %v639_v24 }
 0x28e   : > { %765 = vmatprep.subr.mxu1 %v636_v26 }
 0x28f   : > { %766 = vmatpush2.msra.mxu1 %v635_v28 }
 0x316   : > { %v451_v30 = vpop.f32.mrf.mxu1 }
 0x317   : > { %552 = vmatprep.mubr.f32.mxu0 %v451_v30  ;;  %v632_v30 = vld [vmem:[#allocation5 + $0x408] sm:$0xff] }
 0x318   : > { %v1214_v35 = vpop.f32.mrf.mxu1  ;;  %553 = vmatmul.mubr.f32.vlgmr.msra.gmra.mxu0 %v1448_v34  ;;  %v598_v34 = vld [vmem:[#allocation5 + $0x220] sm:$0xff]  ;;  %767 = vmatprep.subr.mxu1 %v632_v30 }
 0x319   : > { %781 = vmatpush1.msra.mxu0 %v621_v31  ;;  %844 = vmatprep.mubr.f32.mxu0 %v1440_v14  ;;  %v594_v14 = vld [vmem:[#allocation5 + $0x1e8] sm:$0xff]  ;;  %v634_v31 = vld [vmem:[#allocation5 + $0x418] sm:$0xff]  ;;  %v633_v35 = vld [vmem:[#allocation5 + $0x410] sm:$0xff] }
 0x31a   : > { %782 = vmatprep.subr.mxu0 %v618_v33  ;;  %v631_v33 = vld [vmem:[#allocation5 + $0x400] sm:$0xff] }
 0x31b   : > { %783 = vmatpush1.msra.mxu0 %v617_v36  ;;  %768 = vmatpush2.msra.mxu1 %v631_v33  ;;  %v628_v36 = vld [vmem:[#allocation5 + $0x3d0] sm:$0xff] }
 0x31c   : > { %784 = vmatprep.subr.mxu0 %v614_v37  ;;  %v630_v37 = vld [vmem:[#allocation5 + $0x3e0] sm:$0xff]  ;;  %769 = vmatprep.subr.mxu1 %v628_v36 }
 0x31d   : > { %785 = vmatpush1.msra.mxu0 %v613_v38  ;;  %v627_v38 = vld [vmem:[#allocation5 + $0x3c8] sm:$0xff] }
 0x31e   : > { %786 = vmatprep.subr.mxu0 %v610_v39  ;;  %v629_v39 = vld [vmem:[#allocation5 + $0x3d8] sm:$0xff]  ;;  %770 = vmatpush2.msra.mxu1 %v627_v38  ;;  %v886_v38 = vld [vmem:[%s1573_s5 + $0x6] sm:$0x1] }
 0x31f   : > { %787 = vmatpush1.msra.mxu0 %v609_v40  ;;  %v624_v40 = vld [vmem:[#allocation5 + $0x398] sm:$0xff] }
 0x320   : > { %788 = vmatprep.subr.mxu0 %v606_v41  ;;  %v626_v41 = vld [vmem:[#allocation5 + $0x3a8] sm:$0xff]  ;;  %771 = vmatprep.subr.mxu1 %v624_v40 }
 0x321   : > { %789 = vmatpush1.msra.mxu0 %v605_v43  ;;  %v623_v43 = vld [vmem:[#allocation5 + $0x390] sm:$0xff] }
 0x322   : > { %790 = vmatprep.subr.mxu0 %v602_v44  ;;  %v625_v44 = vld [vmem:[#allocation5 + $0x3a0] sm:$0xff]  ;;  %772 = vmatpush2.msra.mxu1 %v623_v43 }
 0x323   : > { %791 = vmatpush1.msra.mxu0 %v601_v45  ;;  %1215 = vmatprep.subr.mxu1 %v1351_v42 }
 0x324   : > { %792 = vmatprep.subr.mxu0 %v598_v34  ;;  %v487_v34 = vld [vmem:[%s1573_s5 + $0x1] sm:$0x1] }
 0x325   : > { %793 = vmatpush1.msra.mxu0 %v597_v46 }
 0x326   : > { %794 = vmatprep.subr.mxu0 %v594_v14 }
 0x327   : > { %795 = vmatpush1.msra.mxu0 %v593_v47 }
 0x328   : > { %796 = vmatprep.subr.mxu0 %v590_v48 }
 0x329   : > { %797 = vmatpush1.msra.mxu0 %v589_v49  ;;  %v885_v49 = vld [vmem:[#allocation5 + $0x378] sm:$0xff] }
 0x32a   : > { %798 = vmatprep.subr.mxu0 %v586_v50  ;;  %v884_v50 = vld [vmem:[#allocation5 + $0x340] sm:$0xff] }
 0x32b   : > { %799 = vmatpush1.msra.mxu0 %v585_v51  ;;  %v883_v51 = vld [vmem:[#allocation5 + $0x308] sm:$0xff] }
 0x32c   : > { %800 = vmatprep.subr.mxu0 %v582_v52  ;;  %v882_v52 = vld [vmem:[#allocation5 + $0x2d0] sm:$0xff] }
 0x32d   : > { %801 = vmatpush1.msra.mxu0 %v581_v53  ;;  %v881_v53 = vld [vmem:[#allocation5 + $0x298] sm:$0xff] }
 0x32e   : > { %802 = vmatprep.subr.mxu0 %v578_v54  ;;  %v880_v54 = vld [vmem:[#allocation5 + $0x260] sm:$0xff] }
 0x32f   : > { %803 = vmatpush1.msra.mxu0 %v577_v55  ;;  %v879_v55 = vld [vmem:[#allocation5 + $0x228] sm:$0xff] }
 0x330   : > { %804 = vmatprep.subr.mxu0 %v574_v56  ;;  %v878_v56 = vld [vmem:[#allocation5 + $0x1f0] sm:$0xff] }
 0x331   : > { %805 = vmatpush1.msra.mxu0 %v573_v57  ;;  %v877_v57 = vld [vmem:[#allocation5 + $0x1b8] sm:$0xff] }
 0x332   : > { %806 = vmatprep.subr.mxu0 %v570_v58  ;;  %v876_v58 = vld [vmem:[#allocation5 + $0x180] sm:$0xff] }
 0x333   : > { %807 = vmatpush1.msra.mxu0 %v569_v59  ;;  %v875_v59 = vld [vmem:[#allocation5 + $0x148] sm:$0xff] }
 0x334   : > { %808 = vmatprep.subr.mxu0 %v566_v60  ;;  %v874_v60 = vld [vmem:[#allocation5 + $0x110] sm:$0xff] }
 0x335   : > { %809 = vmatpush1.msra.mxu0 %v565_v61  ;;  %v873_v61 = vld [vmem:[#allocation5 + $0xd8] sm:$0xff] }
 0x336   : > { %810 = vmatprep.subr.mxu0 %v562_v62  ;;  %v872_v62 = vld [vmem:[#allocation5 + $0xa0] sm:$0xff] }
 0x337   : > { %811 = vmatpush1.msra.mxu0 %v561_v63  ;;  %v871_v63 = vld [vmem:[#allocation5 + $0x68] sm:$0xff] }
 0x338   : > { %812 = vmatprep.subr.mxu0 %v686_v0  ;;  %v870_v0 = vld [vmem:[#allocation5 + $0x30] sm:$0xff] }
 0x339   : > { %813 = vmatpush2.msra.mxu0 %v685_v1  ;;  %v689_v1 = vlaneseq }
 0x33a   : > { %814 = vmatprep.subr.mxu0 %v682_v2 }
 0x33b   : > { %815 = vmatpush2.msra.mxu0 %v681_v3  ;;  %v690_v2 = vshrl.u32 %v689_v1, 7  ;;  %vm999_vm2 = vcmp.lt.s32.totalorder %v689_v1, 384 }
 0x33c   : > { %816 = vmatprep.subr.mxu0 %v678_v4  ;;  %v687_v4 = vld [vmem:[%s1573_s5 + $0x2] sm:$0xf] }
 0x33d   : > { %817 = vmatpush2.msra.mxu0 %v677_v5  ;;  %v691_v3 = vsub.s32 0, %v690_v2 }
 0x33e   : > { %818 = vmatprep.subr.mxu0 %v674_v6  ;;  %v695_v6 = vsub.s32 1, %v690_v2 }
 0x33f   : > { %819 = vmatpush2.msra.mxu0 %v673_v7  ;;  %v692_v5 = vrot.slane %v687_v4, %v691_v3 }
 0x340   : > { %820 = vmatprep.subr.mxu0 %v670_v8 }
 0x341   : > { %821 = vmatpush2.msra.mxu0 %v669_v9 }
 0x342   : > { %822 = vmatprep.subr.mxu0 %v666_v10  ;;  %v696_v10 = vrot.slane %v687_v4, %v695_v6 }
 0x343   : > { %823 = vmatpush2.msra.mxu0 %v665_v11 }
 0x344   : > { %824 = vmatprep.subr.mxu0 %v662_v12 }
 0x345   : > { %825 = vmatpush2.msra.mxu0 %v661_v13 }
 0x346   : > { %826 = vmatprep.subr.mxu0 %v658_v15 }
 0x347   : > { %827 = vmatpush2.msra.mxu0 %v657_v16  ;;  %v703_v16 = vsub.s32 3, %v690_v2 }
 0x348   : > { %828 = vmatprep.subr.mxu0 %v654_v17 }
 0x349   : > { %829 = vmatpush2.msra.mxu0 %v653_v18  ;;  %v699_v18 = vsub.s32 2, %v690_v2 }
 0x34a   : > { %830 = vmatprep.subr.mxu0 %v650_v19 }
 0x34b   : > { %831 = vmatpush2.msra.mxu0 %v649_v20  ;;  %v704_v20 = vrot.slane %v687_v4, %v703_v16 }
 0x34c   : > { %832 = vmatprep.subr.mxu0 %v646_v21 }
 0x34d   : > { %833 = vmatpush2.msra.mxu0 %v645_v22  ;;  %v700_v22 = vrot.slane %v687_v4, %v699_v18 }
 0x34e   : > { %834 = vmatprep.subr.mxu0 %v642_v23 }
 0x34f   : > { %835 = vmatpush2.msra.mxu0 %v641_v25 }
 0x350   : > { %836 = vmatprep.subr.mxu0 %v638_v27 }
 0x351   : > { %837 = vmatpush2.msra.mxu0 %v637_v29 }
 0x352   : > { %838 = vmatprep.subr.mxu0 %v634_v31 }
 0x353   : > { %839 = vmatpush2.msra.mxu0 %v633_v35  ;;  %v1294_v35 = vld [vmem:[#allocation2] sm:$0x1] }
 0x354   : > { %840 = vmatprep.subr.mxu0 %v630_v37 }
 0x355   : > { %841 = vmatpush2.msra.mxu0 %v629_v39 }
 0x356   : > { %842 = vmatprep.subr.mxu0 %v626_v41 }
 0x357   : > { %843 = vmatpush2.msra.mxu0 %v625_v44 }
 0x3d8   : > { %v1160_v45 = vpop.f32.mrf.mxu0 }
 0x3da   : > { %v1161_v46 = vpop.f32.mrf.mxu0 }
 0x3db   : > { %v1162_v14 = vadd.f32 %v1161_v46, %v1160_v45 }
 0x3dd   : > { %v555_v47 = vadd.f32 %v1162_v14, %v487_v34 }
 0x3df   : > { %v558_v48 = vmax.f32 %v555_v47, 0.0 }
 0x3e1   : > { %774 = vmatmul.mubr.f32.vlgmr.msra.gmra.mxu1 %v558_v48  ;;  %845 = vmatmul.mubr.f32.vlgmr.msra.gmra.mxu0 %v558_v48  ;;  %v1353_v48 = vmov 1966171168  }
 0x3e2   : > { %1247 = vmatprep.mubr.msk.f32.mxu1 %vm1352_vm1, %v1351_v42  ;;  %1216 = vmatpush3.msra.mxu1 %v885_v49  ;;  %v975_v49 = vunpack.c.l.s4 %v1353_v48 }
 0x3e3   : > { %1217 = vmatprep.subr.mxu1 %v1351_v42 }
 0x3e4   : > { %1218 = vmatpush3.msra.mxu1 %v884_v50  ;;  %v976_v50 = vunpack.c.0.s8 %v975_v49 }
 0x3e5   : > { %1219 = vmatprep.subr.mxu1 %v1351_v42 }
 0x3e6   : > { %1220 = vmatpush3.msra.mxu1 %v883_v51 }
 0x3e7   : > { %1221 = vmatprep.subr.mxu1 %v1351_v42 }
 0x3e8   : > { %1222 = vmatpush3.msra.mxu1 %v882_v52 }
 0x3e9   : > { %1223 = vmatprep.subr.mxu1 %v1351_v42 }
 0x3ea   : > { %1224 = vmatpush3.msra.mxu1 %v881_v53  ;;  %v979_v53 = vsub.s32 %v976_v50, %v690_v2 }
 0x3eb   : > { %1225 = vmatprep.subr.mxu1 %v1351_v42 }
 0x3ec   : > { %1226 = vmatpush3.msra.mxu1 %v880_v54 }
 0x3ed   : > { %1227 = vmatprep.subr.mxu1 %v1351_v42 }
 0x3ee   : > { %1228 = vmatpush3.msra.mxu1 %v879_v55 }
 0x3ef   : > { %1229 = vmatprep.subr.mxu1 %v1351_v42 }
 0x3f0   : > { %1230 = vmatpush3.msra.mxu1 %v878_v56  ;;  %v987_v56 = vrot.slane %v1526_v32, %v979_v53 }
 0x3f1   : > { %1231 = vmatprep.subr.mxu1 %v1351_v42 }
 0x3f2   : > { %1232 = vmatpush3.msra.mxu1 %v877_v57 }
 0x3f3   : > { %1233 = vmatprep.subr.mxu1 %v1351_v42 }
 0x3f4   : > { %1234 = vmatpush3.msra.mxu1 %v876_v58 }
 0x3f5   : > { %1235 = vmatprep.subr.mxu1 %v1351_v42 }
 0x3f6   : > { %1236 = vmatpush3.msra.mxu1 %v875_v59 }
 0x3f7   : > { %1237 = vmatprep.subr.mxu1 %v1351_v42 }
 0x3f8   : > { %1238 = vmatpush3.msra.mxu1 %v874_v60 }
 0x3f9   : > { %1239 = vmatprep.subr.mxu1 %v1351_v42 }
 0x3fa   : > { %1240 = vmatpush3.msra.mxu1 %v873_v61 }
 0x3fb   : > { %1241 = vmatprep.subr.mxu1 %v1351_v42 }
 0x3fc   : > { %1242 = vmatpush3.msra.mxu1 %v872_v62 }
 0x3fd   : > { %1243 = vmatprep.subr.mxu1 %v1351_v42 }
 0x3fe   : > { %1244 = vmatpush3.msra.mxu1 %v871_v63 }
 0x3ff   : > { %1245 = vmatprep.subr.mxu1 %v1351_v42 }
 0x400   : > { %1246 = vmatpush3.msra.mxu1 %v870_v0 }
 0x4a1   : > { %v775_v7 = vpop.f32.mrf.mxu1  ;;  %v846_v17 = vpop.f32.mrf.mxu0 }
 0x4a2   : > { %v776_v8 = vadd.f32 %v775_v7, %v692_v5  ;;  %v847_v26 = vadd.f32 %v846_v17, %v700_v22 }
 0x4a3   : > { %v777_v11 = vpop.f32.mrf.mxu1  ;;  %v848_v21 = vpop.f32.mrf.mxu0 }
 0x4a4   : > { %v1072_v9 = vmul.f32 -1.442695, %v776_v8  ;;  %v778_v12 = vadd.f32 %v777_v11, %v696_v10  ;;  %v849_v24 = vadd.f32 %v848_v21, %v704_v20 }
 0x4a6   : > { %1280 = vpow2.f32 %v1072_v9  ;;  %v1073_v13 = vmul.f32 -1.442695, %v778_v12 }
 0x4a8   : > { %1282 = vpow2.f32 %v1073_v13 }
 0x4b3   : > { %v1281_v42 = vpop.eup %1280 }
 0x4b4   : > { %v857_v15 = vadd.f32 1.0, %v1281_v42 }
 0x4b5   : > { %v1283_v19 = vpop.eup %1282 }
 0x4b6   : > { %1284 = vrcp.f32 %v857_v15  ;;  %v858_v23 = vadd.f32 1.0, %v1283_v19 }
 0x4b8   : > { %1286 = vrcp.f32 %v858_v23 }
 0x4c3   : > { %v1285_v25 = vpop.eup %1284 }
 0x4c4   : > { %v863_v27 = vmul.f32 %v1285_v25, %v849_v24 }
 0x4c5   : > { %v1287_v29 = vpop.eup %1286 }
 0x4c6   : > { %v864_v28 = vadd.f32 %v863_v27, %v847_v26  ;;  %v866_v30 = vsub.f32 1.0, %v1287_v29  ;;  %v868_v36 = vmul.f32 %v1294_v35, %v1287_v29 }
 0x4c8   : > { %1288 = vtanh.f32 %v864_v28 }
 0x4d5   : > { %v1289_v31 = vpop.eup %1288 }
 0x4d6   : > { %v867_v33 = vmul.f32 %v1289_v31, %v866_v30 }
 0x4d8   : > { %v869_v37 = vadd.f32 %v868_v36, %v867_v33 }
 0x4da   : > { %1248 = vmatmul.mubr.f32.vlgmr.msra.gmra.mxu1 %v869_v37  ;;  %969 = vst [vmem:[#allocation2] sm:$0x1] %v869_v37 }
 0x59a   : > { %v953_v39 = vpop.f32.mrf.mxu1 }
 0x59b   : > { %v954_v40 = vadd.f32 %v953_v39, %v886_v38 }
 0x59c   : > { %v1249_v41 = vpop.f32.mrf.mxu1 }
 0x59d   : > { %v957_v43 = vsel %vm357_vm0, %v954_v40, -inf }
 0x59e   : > { %958 = vmax.xlane.f32.xlu1 %v957_v43 }
 0x627   : > { %v959_v44 = vpop.xlane.xlu1 %958 }
 0x628   : > { %v960_v45 = vsub.f32 %v954_v40, %v959_v44 }
 0x62a   : > { %v961_v34 = vmul.f32 1.442695, %v960_v45 }
 0x62c   : > { %1290 = vpow2.f32 %v961_v34 }
 0x639   : > { %v1291_v46 = vpop.eup %1290 }
 0x63a   : > { %v963_v14 = vsel %vm357_vm0, %v1291_v46, 0.0 }
 0x63b   : > { %964 = vadd.xlane.f32.xlu1 %v963_v14 }
 0x6c4   : > { %v965_v47 = vpop.xlane.xlu1 %964 }
 0x6c5   : > { %1292 = vlog2.f32 %v965_v47 }
 0x6d2   : > { %v1293_v51 = vpop.eup %1292 }
 0x6d3   : > { %v967_v52 = vmul.f32 0.6931472, %v1293_v51 }
 0x6d5   : > { %v968_v54 = vsub.f32 %v960_v45, %v967_v52 }
 0x6d7   : > { %v973_v55 = vcombine.low %v968_v54, %v869_v37 }
 0x6d9   : > { %v980_v57 = vrot.slane %v973_v55, %v979_v53 }
 0x6db   : > { %v988_v58 = vcombine.low %v980_v57, %v987_v56 }
 0x6dd   : > { %v995_v59 = vrot.slane %v988_v58, %v979_v53 }
 0x6df   : > { %1001 = vst.msk [vmem:[%s1427_s16] sm:$0x7] %vm999_vm2, %v995_v59 }
 0x6e0 PF: > { %s23_s26 = sadd.s32 1, %s1345_s26  }
 0x6e1   : > { %p20_p8 = scmp.ge.s32.totalorder %s23_s26, 10  }
 0x6e3   :  { %22 = sbr.rel (!%p20_p8) target bundleno = 16 (0x10), region = 79 }
 0x6e8   :  { %1021 = vsyncpa [#allocation6], 1 }
 0x6e9   :  { %1023 = vsyncpa [#allocation6 + $0x1], 1 }

</bundles_post_ra>
